<compile_context>
chip_gen: v7x
topology: tpu7x:2x2x1
jax: 0.10.0
libtpu: 0.0.40
codegen_flags: <defaults>
</compile_context>

<pallas_src>
import functools

import jax
import jax.numpy as jnp
from jax.experimental import pallas as pl
from jax.experimental.pallas import tpu as pltpu


def encoder_kernel(x_ref, eps_ref,
                   w1_ref, b1_ref, w2_ref, b2_ref, wh_ref, bh_ref,
                   out_ref, *, latent_dim):
    x = x_ref[...]

    # layer 1 + ReLU
    h1 = jnp.dot(x, w1_ref[...], preferred_element_type=jnp.float32) + b1_ref[...]
    h1 = jnp.maximum(h1, 0.0)

    # layer 2 + ReLU
    h2 = jnp.dot(h1, w2_ref[...], preferred_element_type=jnp.float32) + b2_ref[...]
    h2 = jnp.maximum(h2, 0.0)

    # fused mu/logvar heads: one matmul into (tb, 2*latent)
    heads = jnp.dot(h2, wh_ref[...], preferred_element_type=jnp.float32) + bh_ref[...]
    mu = heads[:, :latent_dim]
    logvar = heads[:, latent_dim:]

    var = jnp.exp(0.5 * logvar)
    z = mu + var * eps_ref[...]

    # single lane-denser output slab: [z | mu | logvar]
    out_ref[...] = jnp.concatenate([z, mu, logvar], axis=-1)


def encoder_forward(state, params, eps, *, batch_tile=256):
    """state: (B, num_inputs) f32, eps: (B, latent) f32 ~ U[0,1).

    params: dict with pre-transposed weights:
      w1 (in, hid), b1 (1, hid), w2 (hid, hid), b2 (1, hid),
      wh (hid, 2*latent) = [Wm | Wv], bh (1, 2*latent) = [bm | bv].
    Returns (z, mu, logvar), each (B, latent).
    """
    B, num_inputs = state.shape
    hidden_dim = params["w1"].shape[1]
    two_latent = params["wh"].shape[1]
    latent_dim = two_latent // 2

    # Pick a batch tile: a multiple of 8 (sublane) rows, padded grid.
    tb = batch_tile
    if B < tb:
        tb = max(8, ((B + 7) // 8) * 8)
    b_pad = pl.cdiv(B, tb) * tb
    if b_pad != B:
        state = jnp.pad(state, ((0, b_pad - B), (0, 0)))
        eps = jnp.pad(eps, ((0, b_pad - B), (0, 0)))

    grid = (b_pad // tb,)
    kernel = functools.partial(encoder_kernel, latent_dim=latent_dim)

    out = pl.pallas_call(
        kernel,
        out_shape=jax.ShapeDtypeStruct((b_pad, 3 * latent_dim), jnp.float32),
        grid=grid,
        in_specs=[
            # streamed per-tile activations
            pl.BlockSpec((tb, num_inputs), lambda i: (i, 0)),
            pl.BlockSpec((tb, latent_dim), lambda i: (i, 0)),
            # VMEM-resident weights / biases (same block every grid step)
            pl.BlockSpec((num_inputs, hidden_dim), lambda i: (0, 0)),
            pl.BlockSpec((1, hidden_dim), lambda i: (0, 0)),
            pl.BlockSpec((hidden_dim, hidden_dim), lambda i: (0, 0)),
            pl.BlockSpec((1, hidden_dim), lambda i: (0, 0)),
            pl.BlockSpec((hidden_dim, two_latent), lambda i: (0, 0)),
            pl.BlockSpec((1, two_latent), lambda i: (0, 0)),
        ],
        out_specs=pl.BlockSpec((tb, 3 * latent_dim), lambda i: (i, 0)),
        compiler_params=pltpu.CompilerParams(
            dimension_semantics=("parallel",)),
    )(state, eps,
      params["w1"], params["b1"],
      params["w2"], params["b2"],
      params["wh"], params["bh"])

    out = out[:B]
    z = out[:, :latent_dim]
    mu = out[:, latent_dim:2 * latent_dim]
    logvar = out[:, 2 * latent_dim:]
    return z, mu, logvar


def init_params(key, num_inputs, hidden_dim, latent_dim):
    """Deterministic synthetic init (PyTorch-Linear-like uniform ranges).

    Weights are stored already transposed: (in_features, out_features).
    The mu/logvar heads are concatenated into one (hidden, 2*latent) matrix.
    """
    def linear(k, fan_in, fan_out):
        kw, kb = jax.random.split(k)
        bound = 1.0 / jnp.sqrt(fan_in)
        w = jax.random.uniform(kw, (fan_in, fan_out), jnp.float32, -bound, bound)
        b = jax.random.uniform(kb, (1, fan_out), jnp.float32, -bound, bound)
        return w, b

    k1, k2, k3, k4 = jax.random.split(key, 4)
    w1, b1 = linear(k1, num_inputs, hidden_dim)
    w2, b2 = linear(k2, hidden_dim, hidden_dim)
    wm, bm = linear(k3, hidden_dim, latent_dim)
    wv, bv = linear(k4, hidden_dim, latent_dim)
    return {
        "w1": w1, "b1": b1,
        "w2": w2, "b2": b2,
        "wh": jnp.concatenate([wm, wv], axis=1),
        "bh": jnp.concatenate([bm, bv], axis=1),
    }


if __name__ == "__main__":
    key = jax.random.PRNGKey(0)
    k_params, k_state, k_eps = jax.random.split(key, 3)

    # Small shapes consistent with the module's forward.
    batch, num_inputs, hidden_dim, latent_dim = 8, 32, 32, 16

    params = init_params(k_params, num_inputs, hidden_dim, latent_dim)
    state = jax.random.normal(k_state, (batch, num_inputs), dtype=jnp.float32)
    # epsilon ~ Uniform[0,1), matching torch.rand_like; drawn host-side because
    # pltpu.prng_* has no interpret-mode lowering.
    eps = jax.random.uniform(k_eps, (batch, latent_dim), dtype=jnp.float32)

    z, mu, logvar = encoder_forward(state, params, eps)
    jax.block_until_ready((z, mu, logvar))

    assert z.shape == (batch, latent_dim)
    assert mu.shape == (batch, latent_dim)
    assert logvar.shape == (batch, latent_dim)

    # Pure-JAX reference (same eps -> exact check on z as well).
    h1 = jnp.maximum(state @ params["w1"] + params["b1"], 0.0)
    h2 = jnp.maximum(h1 @ params["w2"] + params["b2"], 0.0)
    heads = h2 @ params["wh"] + params["bh"]
    mu_ref = heads[:, :latent_dim]
    logvar_ref = heads[:, latent_dim:]
    z_ref = mu_ref + jnp.exp(0.5 * logvar_ref) * eps

    assert jnp.allclose(mu, mu_ref, atol=1e-5)
    assert jnp.allclose(logvar, logvar_ref, atol=1e-5)
    assert jnp.allclose(z, z_ref, atol=1e-5)

    print("KERNEL_OK")
</pallas_src>

<mosaic_0001>
module attributes {stable_mosaic.version = 11 : i64} {
  func.func @encoder_kernel(%arg0: i32, %arg1: memref<8x32xf32, #tpu.memory_space<vmem>>, %arg2: memref<8x16xf32, #tpu.memory_space<vmem>>, %arg3: memref<32x32xf32, #tpu.memory_space<vmem>>, %arg4: memref<1x32xf32, #tpu.memory_space<vmem>>, %arg5: memref<32x32xf32, #tpu.memory_space<vmem>>, %arg6: memref<1x32xf32, #tpu.memory_space<vmem>>, %arg7: memref<32x32xf32, #tpu.memory_space<vmem>>, %arg8: memref<1x32xf32, #tpu.memory_space<vmem>>, %arg9: memref<8x48xf32, #tpu.memory_space<vmem>>) attributes {dimension_semantics = [#tpu.dimension_semantics<parallel>], iteration_bounds = array<i64: 1>, scalar_prefetch = 0 : i64, scratch_operands = 0 : i64, tpu.core_type = #tpu.core_type<tc>, window_params = [{transform_indices = @transform_0, window_bounds = array<i64: 8, 32>}, {transform_indices = @transform_1, window_bounds = array<i64: 8, 16>}, {pipeline_mode = #tpu.pipeline_mode<synchronous>, transform_indices = @transform_2, window_bounds = array<i64: 32, 32>}, {pipeline_mode = #tpu.pipeline_mode<synchronous>, transform_indices = @transform_3, window_bounds = array<i64: 1, 32>}, {pipeline_mode = #tpu.pipeline_mode<synchronous>, transform_indices = @transform_4, window_bounds = array<i64: 32, 32>}, {pipeline_mode = #tpu.pipeline_mode<synchronous>, transform_indices = @transform_5, window_bounds = array<i64: 1, 32>}, {pipeline_mode = #tpu.pipeline_mode<synchronous>, transform_indices = @transform_6, window_bounds = array<i64: 32, 32>}, {pipeline_mode = #tpu.pipeline_mode<synchronous>, transform_indices = @transform_7, window_bounds = array<i64: 1, 32>}, {transform_indices = @transform_8, window_bounds = array<i64: 8, 48>}]} {
    %c0 = arith.constant 0 : index
    %c0_0 = arith.constant 0 : index
    %0 = vector.load %arg1[%c0, %c0_0] : memref<8x32xf32, #tpu.memory_space<vmem>>, vector<8x32xf32>
    %c0_1 = arith.constant 0 : index
    %c0_2 = arith.constant 0 : index
    %1 = vector.load %arg3[%c0_1, %c0_2] : memref<32x32xf32, #tpu.memory_space<vmem>>, vector<32x32xf32>
    %cst = arith.constant dense<0.000000e+00> : vector<8x32xf32>
    %2 = tpu.matmul %0, %1, %cst {dimension_numbers = #tpu.dot_dimension_numbers<[1], [0], [0], [1], [0, 0, 1, 1], [], []>} : vector<8x32xf32>, vector<32x32xf32>, vector<8x32xf32> -> vector<8x32xf32>
    %c0_3 = arith.constant 0 : index
    %c0_4 = arith.constant 0 : index
    %3 = vector.load %arg4[%c0_3, %c0_4] : memref<1x32xf32, #tpu.memory_space<vmem>>, vector<1x32xf32>
    %4 = vector.broadcast %3 : vector<1x32xf32> to vector<8x32xf32>
    %5 = arith.addf %2, %4 : vector<8x32xf32>
    %cst_5 = arith.constant 0.000000e+00 : f32
    %6 = vector.broadcast %cst_5 : f32 to vector<8x32xf32>
    %7 = arith.maximumf %5, %6 : vector<8x32xf32>
    %c0_6 = arith.constant 0 : index
    %c0_7 = arith.constant 0 : index
    %8 = vector.load %arg5[%c0_6, %c0_7] : memref<32x32xf32, #tpu.memory_space<vmem>>, vector<32x32xf32>
    %cst_8 = arith.constant dense<0.000000e+00> : vector<8x32xf32>
    %9 = tpu.matmul %7, %8, %cst_8 {dimension_numbers = #tpu.dot_dimension_numbers<[1], [0], [0], [1], [0, 0, 1, 1], [], []>} : vector<8x32xf32>, vector<32x32xf32>, vector<8x32xf32> -> vector<8x32xf32>
    %c0_9 = arith.constant 0 : index
    %c0_10 = arith.constant 0 : index
    %10 = vector.load %arg6[%c0_9, %c0_10] : memref<1x32xf32, #tpu.memory_space<vmem>>, vector<1x32xf32>
    %11 = vector.broadcast %10 : vector<1x32xf32> to vector<8x32xf32>
    %12 = arith.addf %9, %11 : vector<8x32xf32>
    %cst_11 = arith.constant 0.000000e+00 : f32
    %13 = vector.broadcast %cst_11 : f32 to vector<8x32xf32>
    %14 = arith.maximumf %12, %13 : vector<8x32xf32>
    %c0_12 = arith.constant 0 : index
    %c0_13 = arith.constant 0 : index
    %15 = vector.load %arg7[%c0_12, %c0_13] : memref<32x32xf32, #tpu.memory_space<vmem>>, vector<32x32xf32>
    %cst_14 = arith.constant dense<0.000000e+00> : vector<8x32xf32>
    %16 = tpu.matmul %14, %15, %cst_14 {dimension_numbers = #tpu.dot_dimension_numbers<[1], [0], [0], [1], [0, 0, 1, 1], [], []>} : vector<8x32xf32>, vector<32x32xf32>, vector<8x32xf32> -> vector<8x32xf32>
    %c0_15 = arith.constant 0 : index
    %c0_16 = arith.constant 0 : index
    %17 = vector.load %arg8[%c0_15, %c0_16] : memref<1x32xf32, #tpu.memory_space<vmem>>, vector<1x32xf32>
    %18 = vector.broadcast %17 : vector<1x32xf32> to vector<8x32xf32>
    %19 = arith.addf %16, %18 : vector<8x32xf32>
    %20 = vector.extract_strided_slice %19 {offsets = [0, 0], sizes = [8, 16], strides = [1, 1]} : vector<8x32xf32> to vector<8x16xf32>
    %21 = vector.extract_strided_slice %19 {offsets = [0, 16], sizes = [8, 16], strides = [1, 1]} : vector<8x32xf32> to vector<8x16xf32>
    %cst_17 = arith.constant 5.000000e-01 : f32
    %22 = vector.broadcast %cst_17 : f32 to vector<8x16xf32>
    %23 = arith.mulf %22, %21 : vector<8x16xf32>
    %24 = math.exp %23 : vector<8x16xf32>
    %c0_18 = arith.constant 0 : index
    %c0_19 = arith.constant 0 : index
    %25 = vector.load %arg2[%c0_18, %c0_19] : memref<8x16xf32, #tpu.memory_space<vmem>>, vector<8x16xf32>
    %26 = arith.mulf %24, %25 : vector<8x16xf32>
    %27 = arith.addf %20, %26 : vector<8x16xf32>
    %28 = tpu.concatenate %27, %20, %21 in 1 : vector<8x16xf32>, vector<8x16xf32>, vector<8x16xf32> -> vector<8x48xf32>
    %c0_20 = arith.constant 0 : index
    %c0_21 = arith.constant 0 : index
    %29 = vector.load %arg9[%c0_20, %c0_21] : memref<8x48xf32, #tpu.memory_space<vmem>>, vector<8x48xf32>
    tpu.vector_store %arg9[%c0_20, %c0_21], %28 {strides = array<i32>} : memref<8x48xf32, #tpu.memory_space<vmem>>, vector<8x48xf32>,
    return
  }
  func.func @transform_0(%arg0: i32) -> (i32, i32) {
    %c0_i32 = arith.constant 0 : i32
    %c0_i32_0 = arith.constant 0 : i32
    return %arg0, %c0_i32 : i32, i32
  }
  func.func @transform_1(%arg0: i32) -> (i32, i32) {
    %c0_i32 = arith.constant 0 : i32
    %c0_i32_0 = arith.constant 0 : i32
    return %arg0, %c0_i32 : i32, i32
  }
  func.func @transform_2(%arg0: i32) -> (i32, i32) {
    %c0_i32 = arith.constant 0 : i32
    %c0_i32_0 = arith.constant 0 : i32
    %c0_i32_1 = arith.constant 0 : i32
    return %c0_i32, %c0_i32_0 : i32, i32
  }
  func.func @transform_3(%arg0: i32) -> (i32, i32) {
    %c0_i32 = arith.constant 0 : i32
    %c0_i32_0 = arith.constant 0 : i32
    %c0_i32_1 = arith.constant 0 : i32
    return %c0_i32, %c0_i32_0 : i32, i32
  }
  func.func @transform_4(%arg0: i32) -> (i32, i32) {
    %c0_i32 = arith.constant 0 : i32
    %c0_i32_0 = arith.constant 0 : i32
    %c0_i32_1 = arith.constant 0 : i32
    return %c0_i32, %c0_i32_0 : i32, i32
  }
  func.func @transform_5(%arg0: i32) -> (i32, i32) {
    %c0_i32 = arith.constant 0 : i32
    %c0_i32_0 = arith.constant 0 : i32
    %c0_i32_1 = arith.constant 0 : i32
    return %c0_i32, %c0_i32_0 : i32, i32
  }
  func.func @transform_6(%arg0: i32) -> (i32, i32) {
    %c0_i32 = arith.constant 0 : i32
    %c0_i32_0 = arith.constant 0 : i32
    %c0_i32_1 = arith.constant 0 : i32
    return %c0_i32, %c0_i32_0 : i32, i32
  }
  func.func @transform_7(%arg0: i32) -> (i32, i32) {
    %c0_i32 = arith.constant 0 : i32
    %c0_i32_0 = arith.constant 0 : i32
    %c0_i32_1 = arith.constant 0 : i32
    return %c0_i32, %c0_i32_0 : i32, i32
  }
  func.func @transform_8(%arg0: i32) -> (i32, i32) {
    %c0_i32 = arith.constant 0 : i32
    %c0_i32_0 = arith.constant 0 : i32
    return %arg0, %c0_i32 : i32, i32
  }
}

</mosaic_0001>

<bundles_post_ra>
// kernel: tpu_custom_call.1
= control target key start
LH: loop header
LB: loop body
LE: loop exit
PB: predicated region body
PF: predicated region fallthrough
CT: control target
= control target key end

     0   :  { %13 = vsyncpa [#allocation3], 0  ;;  %s772_s0 = inlined_call_operand.hbm [shape: f32[8,32], index: 0, kind: input, shape index: {}]   ;;  %s773_s1 = inlined_call_operand.hbm [shape: f32[8,16], index: 1, kind: input, shape index: {}]   ;;  %s774_s2 = inlined_call_operand.hbm [shape: f32[32,32], index: 2, kind: input, shape index: {}]   ;;  %s775_s3 = inlined_call_operand.vmem [shape: f32[1,32], index: 3, kind: input, shape index: {}]   ;;  %s776_s4 = inlined_call_operand.hbm [shape: f32[32,32], index: 4, kind: input, shape index: {}]   ;;  %s777_s5 = inlined_call_operand.vmem [shape: f32[1,32], index: 5, kind: input, shape index: {}]   ;;  %s778_s6 = inlined_call_operand.hbm [shape: f32[32,32], index: 6, kind: input, shape index: {}]   ;;  %s779_s7 = inlined_call_operand.vmem [shape: f32[1,32], index: 7, kind: input, shape index: {}]   ;;  %s780_s8 = inlined_call_operand.hbm [shape: f32[8,48], index: 8, kind: output, shape index: {}]  }
   0x1   :  { %14 = vsyncpa [#allocation6], 0 }
   0x2   :  { %15 = vsyncpa [#allocation9], 0 }
   0x3   :  { %16 = vsyncpa [#allocation4], 0  ;;  %s617_s27 = smov [#allocation5]   ;;  %s477_s9 = scalar_lea.hbm %s773_s1, 128 }
   0x4   :  { %s33_s28 = sshll.u32 %s617_s27, 4  ;;  %p478_p0 = scmp.ne.s32.totalorder %s773_s1, %s477_s9  ;;  %s34_s28 = int_to_ptr.vmem [resolvable:$true] %s33_s28 }
   0x5   :  { %p481_p1 = scmp.lt.u32.totalorder %s477_s9, %s773_s1 }
   0x7   :  { %p483_p2 = pnand %p481_p1, %p478_p0 }
   0x9   :  { %486 = shalt.err (!%p483_p2)
}
   0xa   :  { %s487_s14 = scalar_lea.vmem %s34_s28, 128  ;;  %p492_p4 = scmp.lt.s32.totalorder %s34_s28, %s34_s28 }
   0xb   :  { %p488_p3 = scmp.ne.s32.totalorder %s34_s28, %s487_s14  ;;  %p493_p5 = scmp.lt.s32.totalorder %s487_s14, %s487_s14 }
   0xd   :  { %p494_p6 = por %p493_p5, %p492_p4 }
   0xf   :  { %p495_p7 = pnand %p494_p6, %p488_p3 }
  0x11   :  { %498 = shalt.err (!%p495_p7)
}
  0x12   :  { %36 = dma.hbm_to_vmem [thread:$0]  %s773_s1, 128, %s34_s28, [#allocation6]  }
  0x13   :  { %s618_s17 = smov [#allocation8]   ;;  %s619_s19 = smov [#allocation2]  }
  0x14   :  { %s56_s18 = sshll.u32 %s618_s17, 4  ;;  %s23_s20 = sshll.u32 %s619_s19, 4  ;;  %s57_s18 = int_to_ptr.vmem [resolvable:$true] %s56_s18  ;;  %s24_s20 = int_to_ptr.vmem [resolvable:$true] %s23_s20 }
  0x15   :  { %s499_s23 = scalar_lea.hbm %s776_s4, 512 }
  0x16   :  { %p500_p8 = scmp.ne.s32.totalorder %s776_s4, %s499_s23  ;;  %p503_p9 = scmp.lt.u32.totalorder %s499_s23, %s776_s4 }
  0x18   :  { %p505_p10 = pnand %p503_p9, %p500_p8 }
  0x1a   :  { %508 = shalt.err (!%p505_p10)
}
  0x1b   :  { %s509_s1 = scalar_lea.vmem %s57_s18, 512  ;;  %p514_p12 = scmp.lt.s32.totalorder %s57_s18, %s57_s18 }
  0x1c   :  { %p510_p11 = scmp.ne.s32.totalorder %s57_s18, %s509_s1  ;;  %p515_p13 = scmp.lt.s32.totalorder %s509_s1, %s509_s1 }
  0x1e   :  { %p516_p0 = por %p515_p13, %p514_p12 }
  0x20   :  { %p517_p1 = pnand %p516_p0, %p510_p11 }
  0x22   :  { %520 = shalt.err (!%p517_p1)
}
  0x23   :  { %s620_s28 = smov 128   ;;  %s621_s29 = smov 8  }
  0x24   :  { %62 = dma.hbm_to_vmem [thread:$0]  %s776_s4, 512, %s57_s18, [#allocation9], %s620_s28, %s620_s28, %s621_s29  }
  0x25   :  { %s521_s12 = scalar_lea.hbm %s772_s0, 128 }
  0x26   :  { %p522_p2 = scmp.ne.s32.totalorder %s772_s0, %s521_s12  ;;  %p525_p3 = scmp.lt.u32.totalorder %s521_s12, %s772_s0 }
  0x28   :  { %p527_p4 = pnand %p525_p3, %p522_p2 }
  0x2a   :  { %530 = shalt.err (!%p527_p4)
}
  0x2b   :  { %s531_s17 = scalar_lea.vmem %s24_s20, 128  ;;  %p536_p6 = scmp.lt.s32.totalorder %s24_s20, %s24_s20 }
  0x2c   :  { %p532_p5 = scmp.ne.s32.totalorder %s24_s20, %s531_s17  ;;  %p537_p7 = scmp.lt.s32.totalorder %s531_s17, %s531_s17 }
  0x2e   :  { %p538_p8 = por %p537_p7, %p536_p6 }
  0x30   :  { %p539_p9 = pnand %p538_p8, %p532_p5 }
  0x32   :  { %542 = shalt.err (!%p539_p9)
}
  0x33   :  { %26 = dma.hbm_to_vmem [thread:$0]  %s772_s0, 128, %s24_s20, [#allocation3]  }
  0x34   :  { %s622_s19 = smov [#allocation7]   ;;  %s623_s22 = smov [#allocation10]  }
  0x35   :  { %s42_s21 = sshll.u32 %s622_s19, 4  ;;  %s70_s23 = sshll.u32 %s623_s22, 4  ;;  %s43_s21 = int_to_ptr.vmem [resolvable:$true] %s42_s21  ;;  %s71_s23 = int_to_ptr.vmem [resolvable:$true] %s70_s23 }
  0x36   :  { %s543_s26 = scalar_lea.hbm %s774_s2, 512 }
  0x37   :  { %p544_p10 = scmp.ne.s32.totalorder %s774_s2, %s543_s26  ;;  %p547_p11 = scmp.lt.u32.totalorder %s543_s26, %s774_s2 }
  0x39   :  { %p549_p12 = pnand %p547_p11, %p544_p10 }
  0x3b   :  { %552 = shalt.err (!%p549_p12)
}
  0x3c   :  { %s553_s0 = scalar_lea.vmem %s43_s21, 512  ;;  %p558_p0 = scmp.lt.s32.totalorder %s43_s21, %s43_s21 }
  0x3d   :  { %p554_p13 = scmp.ne.s32.totalorder %s43_s21, %s553_s0  ;;  %p559_p1 = scmp.lt.s32.totalorder %s553_s0, %s553_s0 }
  0x3f   :  { %p560_p2 = por %p559_p1, %p558_p0 }
  0x41   :  { %p561_p3 = pnand %p560_p2, %p554_p13 }
  0x43   :  { %564 = shalt.err (!%p561_p3)
}
  0x44   :  { %48 = dma.hbm_to_vmem [thread:$0]  %s774_s2, 512, %s43_s21, [#allocation6], %s620_s28, %s620_s28, %s621_s29  }
  0x45   :  { %s565_s13 = scalar_lea.hbm %s778_s6, 512 }
  0x46   :  { %p566_p4 = scmp.ne.s32.totalorder %s778_s6, %s565_s13  ;;  %p569_p5 = scmp.lt.u32.totalorder %s565_s13, %s778_s6 }
  0x48   :  { %p571_p6 = pnand %p569_p5, %p566_p4 }
  0x4a   :  { %574 = shalt.err (!%p571_p6)
}
  0x4b   :  { %s575_s4 = scalar_lea.vmem %s71_s23, 512  ;;  %p580_p8 = scmp.lt.s32.totalorder %s71_s23, %s71_s23 }
  0x4c   :  { %p576_p7 = scmp.ne.s32.totalorder %s71_s23, %s575_s4  ;;  %p581_p9 = scmp.lt.s32.totalorder %s575_s4, %s575_s4 }
  0x4e   :  { %p582_p10 = por %p581_p9, %p580_p8 }
  0x50   :  { %p583_p11 = pnand %p582_p10, %p576_p7 }
  0x52   :  { %586 = shalt.err (!%p583_p11)
}
  0x53   :  { %76 = dma.hbm_to_vmem [thread:$0]  %s778_s6, 512, %s71_s23, [#allocation9], %s620_s28, %s620_s28, %s621_s29  }
  0x54   :  { %609 = dma.done.wait [#allocation3], 128  }
  0x55   :  { %610 = vsyncadd [#allocation3], 4294967168 }
  0x56   :  { %611 = dma.done.wait [#allocation6], 640  }
  0x57   :  { %612 = vsyncadd [#allocation6], 4294966656 }
  0x58   :  { %613 = dma.done.wait [#allocation9], 1024  }
  0x59   :  { %614 = vsyncadd [#allocation9], 4294966272  ;;  %v624_v0 = vmov 0.0|0.0   ;;  %vm625_vm0 = vmmov 0   ;;  %v626_v1 = vmov 0.0   ;;  %v95_v2 = vld [vmem:[#allocation7] sm:$0xff] }
  0x5a   :  { %444 = vmatprep.subr.bf16.mxu0 %v624_v0  ;;  %419 = vmatprep.mubr.msk.f32.mxu0 %vm625_vm0, %v626_v1  ;;  %v96_v3 = vld [vmem:[#allocation7 + $0x8] sm:$0xff]  ;;  %v97_v4 = vld [vmem:[#allocation7 + $0x10] sm:$0xff]  ;;  %v98_v6 = vld [vmem:[#allocation7 + $0x18] sm:$0xff]  ;;  %vm106_vm1 = vcmask 261120   ;;  %s627_s29 = smov 16   ;;  %vm368_vm2 = vcmask 130048  }
  0x5b   :  { %450 = vmatprep.subr.bf16.mxu1 %v624_v0  ;;  %430 = vmatprep.mubr.msk.f32.mxu1 %vm625_vm0, %v626_v1  ;;  %v445_v5 = vpack.c.bf16 %v96_v3, %v95_v2  ;;  %v181_v7 = vld [vmem:[#allocation8] sm:$0xff]  ;;  %v182_v8 = vld [vmem:[#allocation8 + $0x8] sm:$0xff]  ;;  %v448_v9 = vpack.c.bf16 %v98_v6, %v97_v4  ;;  %v94_v11 = vld [vmem:[#allocation2] sm:$0xff]  ;;  %s629_s23 = smov [#allocation11]   ;;  %vm371_vm3 = vcmask 392192  }
  0x5c   :  { %v451_v10 = vpack.c.bf16 %v182_v8, %v181_v7  ;;  %v183_v12 = vld [vmem:[#allocation8 + $0x10] sm:$0xff]  ;;  %v184_v13 = vld [vmem:[#allocation8 + $0x18] sm:$0xff]  ;;  %v266_v15 = vld [vmem:[#allocation10] sm:$0xff]  ;;  %s379_s24 = sshll.u32 %s629_s23, 4  ;;  %s380_s24 = int_to_ptr.vmem [resolvable:$true] %s379_s24 }
  0x5d   :  { %446 = vmatpush3.bf16.msra.mxu0 %v445_v5  ;;  %v454_v14 = vpack.c.bf16 %v184_v13, %v183_v12  ;;  %v267_v16 = vld [vmem:[#allocation10 + $0x8] sm:$0xff]  ;;  %v390_v18 = vld [vmem:[%s775_s3] ss:$0 sm:$0xff]  ;;  %v269_v24 = vld [vmem:[#allocation10 + $0x18] sm:$0xff]  ;;  %p592_p13 = scmp.lt.s32.totalorder %s380_s24, %s380_s24 }
  0x5e   :  { %447 = vmatprep.subr.bf16.mxu0 %v624_v0  ;;  %452 = vmatpush3.bf16.msra.mxu1 %v451_v10  ;;  %v457_v17 = vpack.c.bf16 %v267_v16, %v266_v15  ;;  %v268_v23 = vld [vmem:[#allocation10 + $0x10] sm:$0xff]  ;;  %v353_v26 = vld [vmem:[#allocation5] sm:$0xff] }
  0x5f   :  { %453 = vmatprep.subr.bf16.mxu1 %v624_v0  ;;  %v460_v25 = vpack.c.bf16 %v269_v24, %v268_v23  ;;  %355 = vrot.lane.b32.xlu0 %v353_v26, %s627_s29  ;;  %v392_v27 = vld [vmem:[%s777_s5] ss:$0 sm:$0xff]  ;;  %s628_s5 = smov 112  }
  0x60   :  { %v394_v32 = vld [vmem:[%s779_s7] ss:$0 sm:$0xff]  ;;  %s587_s7 = scalar_lea.vmem %s380_s24, 128 }
  0x61   :  { %449 = vmatpush3.bf16.msra.mxu0 %v448_v9  ;;  %p588_p12 = scmp.ne.s32.totalorder %s380_s24, %s587_s7  ;;  %p593_p0 = scmp.lt.s32.totalorder %s587_s7, %s587_s7 }
  0x62   :  { %456 = vmatprep.subr.bf16.mxu0 %v624_v0  ;;  %455 = vmatpush3.bf16.msra.mxu1 %v454_v14 }
  0x63   :  { %p594_p1 = por %p593_p0, %p592_p13 }
  0x64   :  { %420 = vmatmul.mubr.msk.f32.vlgmr.msra.gmra.mrb[0].mxu0 %vm106_vm1, %v94_v11 }
  0x65   :  { %441 = vmatprep.mubr.msk.f32.mxu0 %vm625_vm0, %v626_v1  ;;  %458 = vmatpush3.bf16.msra.mxu0 %v457_v17  ;;  %p595_p2 = pnand %p594_p1, %p588_p12 }
  0x66   :  { %459 = vmatprep.subr.bf16.mxu0 %v624_v0 }
  0x69   :  { %461 = vmatpush3.bf16.msra.mxu0 %v460_v25 }
  0xd1   :  { %v356_v38 = vpop.permute.xlu0 %355 }
 0x137   :  { %v176_v19 = vpop.f32.mrb[0].mxu0 }
 0x138   :  { %v177_v20 = vadd.f32 %v390_v18, %v176_v19  ;;  %v421_v21 = vpop.f32.mrb[1].mxu0 }
 0x13a   :  { %v180_v22 = vmax.f32 %v177_v20, 0.0 }
 0x13c   :  { %431 = vmatmul.mubr.msk.f32.vlgmr.msra.gmra.mrb[0].mxu1 %vm106_vm1, %v180_v22 }
 0x20f   :  { %v261_v28 = vpop.f32.mrb[0].mxu1 }
 0x210   :  { %v262_v29 = vadd.f32 %v392_v27, %v261_v28  ;;  %v432_v30 = vpop.f32.mrb[1].mxu1 }
 0x212   :  { %v265_v31 = vmax.f32 %v262_v29, 0.0 }
 0x214   :  { %442 = vmatmul.mubr.msk.f32.vlgmr.msra.gmra.mrb[2].mxu0 %vm106_vm1, %v265_v31 }
 0x2e7   :  { %v346_v33 = vpop.f32.mrb[2].mxu0 }
 0x2e8   :  { %v347_v34 = vadd.f32 %v394_v32, %v346_v33  ;;  %v443_v35 = vpop.f32.mrb[3].mxu0 }
 0x2ea   :  { %v350_v36 = vmul.f32 0.5, %v347_v34  ;;  %365 = vrot.lane.b32.xlu1 %v347_v34, %s627_s29 }
 0x2ec   :  { %v351_v37 = vmul.f32 1.442695, %v350_v36 }
 0x2ee   :  { %475 = vpow2.f32 %v351_v37 }
 0x2f8   :  { %v476_v39 = vpop.eup %475 }
 0x2f9   :  { %v358_v40 = vmul.f32 %v476_v39, %v356_v38 }
 0x2fb   :  { %360 = vrot.lane.b32.xlu0 %v358_v40, %s628_s5 }
 0x35c   :  { %v366_v43 = vpop.permute.xlu1 %365 }
 0x36d   :  { %v361_v41 = vpop.permute.xlu0 %360 }
 0x36e   :  { %v363_v42 = vadd.f32 %v361_v41, %v347_v34 }
 0x370   :  { %v369_v44 = vsel %vm368_vm2, %v363_v42, %v366_v43 }
 0x371   :  { %v370_v45 = vsel %vm106_vm1, %v369_v44, %v366_v43 }
 0x372   :  { %372 = vst.msk [vmem:[#allocation11] sm:$0xff] %vm371_vm3, %v370_v45 }
 0x373   :  { %598 = shalt.err (!%p595_p2)
}
 0x374   :  { %s599_s27 = scalar_lea.hbm %s780_s8, 128 }
 0x375   :  { %p600_p3 = scmp.ne.s32.totalorder %s780_s8, %s599_s27  ;;  %p603_p4 = scmp.lt.u32.totalorder %s599_s27, %s780_s8 }
 0x377   :  { %p605_p5 = pnand %p603_p4, %p600_p3 }
 0x379   :  { %608 = shalt.err (!%p605_p5)
}
 0x37a   :  { %382 = dma.vmem_to_hbm [thread:$0]  %s380_s24, 128, %s780_s8, [#allocation4]  }
 0x37b   :  { %615 = dma.done.wait [#allocation4], 128  }
 0x37c   :  { %616 = vsyncadd [#allocation4], 4294967168 }
 0x37d   :  { %386 = vsyncpa [#allocation3], 1 }
 0x37e   :  { %387 = vsyncpa [#allocation6], 1 }
 0x37f   :  { %388 = vsyncpa [#allocation9], 1 }
 0x380   :  { %389 = vsyncpa [#allocation4], 1 }

</bundles_post_ra>
